<compile_context>
chip_gen: v5e
topology: v5e:2x2
jax: 0.10.0
libtpu: 0.0.40
codegen_flags: <defaults>
</compile_context>

<pallas_src>
import jax
import jax.numpy as jnp
from jax.experimental import pallas as pl
from jax.experimental.pallas import tpu as pltpu

NEG_PAD = -1e9  # value baked into padded classifier-bias columns


# ----------------------------------------------------------------------------
# Single fused Pallas kernel
# ----------------------------------------------------------------------------
def _vqa_fused_kernel(ids_ref, mask_ref, pix_ref, tok_emb_ref,
                      w_img_ref, b_img_ref,
                      w_enc_ref, b_enc_ref,
                      w_cls_ref, b_cls_ref,
                      logits_ref):
    bpad = ids_ref.shape[0]
    vocab = tok_emb_ref.shape[0]

    # --- CLS-token embedding gather, fused as a one-hot MXU matmul ----------
    ids = ids_ref[...]                                              # (B, 1) i32
    onehot = (jax.lax.broadcasted_iota(jnp.int32, (bpad, vocab), 1) == ids
              ).astype(jnp.bfloat16)                                # (B, V) bf16
    cls_emb = jnp.dot(onehot, tok_emb_ref[...],
                      preferred_element_type=jnp.float32)           # (B, D) f32

    # --- synthetic base: image projection (B, Kimg) @ (Kimg, D) -------------
    img_feat = (
        jnp.dot(pix_ref[...].astype(jnp.bfloat16), w_img_ref[...],
                preferred_element_type=jnp.float32)
        + b_img_ref[...]
    )                                                               # (B, D) f32

    # --- CLS-row hidden state: token embed * mask + image feature -----------
    hidden_cls = cls_emb * mask_ref[...] + img_feat                 # (B, D) f32

    # --- encoder linear + tanh (bf16 MXU operands, f32 accumulate / tanh) ---
    pooled = jnp.tanh(
        jnp.dot(hidden_cls.astype(jnp.bfloat16), w_enc_ref[...],
                preferred_element_type=jnp.float32)
        + b_enc_ref[...]
    )                                                               # (B, D) f32

    # --- per-question classifier head: (B, D) @ (D, Cmax), lane-dense -------
    logits_ref[...] = (
        jnp.dot(pooled.astype(jnp.bfloat16), w_cls_ref[...],
                preferred_element_type=jnp.float32)
        + b_cls_ref[...]
    )                                                               # (B, Cmax) f32


def vqa_fused_call(cls_ids, cls_mask, pix_flat, tok_emb,
                   w_img, b_img, w_enc, b_enc, w_cls_q, b_cls_q):
    """One gridless launch: all operands (< ~400 KB) are VMEM resident.

    For realistic shapes (pix_feat ~150K, D >= 768) replace this with a
    PrefetchScalarGridSpec grid=(Bpad//tb, Kimg//tk): batch axis "parallel"
    (shards over v7x's 2 TCs), Kimg reduction last and "arbitrary" with a
    pl.when-initialized f32 (tb, D) scratch accumulator, and tk sized so two
    (tb, tk) + (tk, D) bf16 buffers fit ~48-56 MiB on v7x (re-derive for the
    128 MiB physical VMEM of v5e/v6e).
    """
    bpad = pix_flat.shape[0]
    cmax = w_cls_q.shape[1]
    vmem = pl.BlockSpec(memory_space=pltpu.MemorySpace.VMEM)
    return pl.pallas_call(
        _vqa_fused_kernel,
        in_specs=[vmem] * 10,
        out_specs=vmem,
        out_shape=jax.ShapeDtypeStruct((bpad, cmax), jnp.float32),
    )(cls_ids, cls_mask, pix_flat, tok_emb,
      w_img, b_img, w_enc, b_enc, w_cls_q, b_cls_q)


# ----------------------------------------------------------------------------
# VQAClassifier forward (generic / "else" branch of the PyTorch module):
#   outputs = base(input_ids, attention_mask, pixel_values)
#   pooled  = outputs.last_hidden_state[:, 0, :]
#   logits  = classifiers[question_idx](pooled)
# ----------------------------------------------------------------------------
def vqa_forward(params, input_ids, attention_mask, pixel_values,
                question_idx, num_classes_per_question):
    B = input_ids.shape[0]
    bpad = max(8, ((B + 7) // 8) * 8)      # sublane-aligned batch for the MXU
    pad = bpad - B

    # TODO(synk): real pretrained base_model (BLIP/CLIP/HF encoder) is a black
    # box with no clean Pallas equivalent; a deterministic synthetic stand-in
    # keeps the same interface (last_hidden_state -> CLS pooling). Only the
    # CLS row feeds the classifier, so only input_ids[:, 0] is embedded.
    cls_ids = input_ids[:, 0:1].astype(jnp.int32)                    # (B, 1)
    cls_mask = attention_mask[:, 0:1].astype(jnp.float32)            # (B, 1)
    pix_flat = pixel_values.reshape(B, -1)                           # NCHW flatten

    if pad:
        cls_ids = jnp.pad(cls_ids, ((0, pad), (0, 0)))
        cls_mask = jnp.pad(cls_mask, ((0, pad), (0, 0)))
        pix_flat = jnp.pad(pix_flat, ((0, pad), (0, 0)))

    # classifiers[question_idx]: static Python-level (ModuleList) selection —
    # only the selected head's padded (D, Cmax) weights are DMA'd.
    w_q = params["w_cls"][question_idx]                              # (D, Cmax) bf16
    b_q = params["b_cls"][question_idx]                              # (1, Cmax) f32

    logits_padded = vqa_fused_call(
        cls_ids, cls_mask, pix_flat,
        params["tok_emb"],
        params["w_img"], params["b_img"],
        params["w_enc"], params["b_enc"],
        w_q, b_q,
    )
    n_cls = num_classes_per_question[question_idx]                   # static
    return logits_padded[:B, :n_cls]


# ----------------------------------------------------------------------------
# Deterministic parameter construction (weights stored bf16 ONCE, biases f32)
# ----------------------------------------------------------------------------
def make_params(key, vocab, D, pix_feat, num_classes_per_question, cmax):
    ks = jax.random.split(key, 8)
    Q = len(num_classes_per_question)
    w_cls = jnp.zeros((Q, D, cmax), jnp.float32)
    b_cls = jnp.full((Q, 1, cmax), NEG_PAD, jnp.float32)   # pad cols -> -1e9
    for q, nc in enumerate(num_classes_per_question):
        kq = jax.random.fold_in(ks[6], q)
        w_q = jax.random.normal(kq, (D, nc), jnp.float32) * 0.05
        b_q = jax.random.normal(jax.random.fold_in(ks[7], q), (1, nc), jnp.float32) * 0.01
        w_cls = w_cls.at[q, :, :nc].set(w_q)
        b_cls = b_cls.at[q, :, :nc].set(b_q)
    return {
        "tok_emb": (jax.random.normal(ks[0], (vocab, D), jnp.float32) * 0.1
                    ).astype(jnp.bfloat16),
        "w_img": (jax.random.normal(ks[1], (pix_feat, D), jnp.float32) * 0.02
                  ).astype(jnp.bfloat16),
        "b_img": jax.random.normal(ks[2], (1, D), jnp.float32) * 0.01,
        "w_enc": (jax.random.normal(ks[3], (D, D), jnp.float32) * 0.1
                  ).astype(jnp.bfloat16),
        "b_enc": jax.random.normal(ks[4], (1, D), jnp.float32) * 0.01,
        "w_cls": w_cls.astype(jnp.bfloat16),
        "b_cls": b_cls,
    }


if __name__ == "__main__":
    # Small shapes consistent with the module's forward.
    B, S, D = 2, 8, 128           # batch, seq, hidden_dim (lane-dense D)
    C, HP, WP = 4, 16, 16         # pixel_values NCHW
    VOCAB = 50
    NUM_CLASSES_PER_QUESTION = [5, 7, 3]
    CMAX = 128                    # lane-dense padded head width
    QUESTION_IDX = 1

    key = jax.random.PRNGKey(0)
    k_in, k_par = jax.random.split(key)
    k1, k2, _ = jax.random.split(k_in, 3)

    input_ids = jax.random.randint(k1, (B, S), 0, VOCAB, dtype=jnp.int32)
    attention_mask = jnp.ones((B, S), dtype=jnp.int32)
    pixel_values = jax.random.normal(k2, (B, C, HP, WP), jnp.float32)

    params = make_params(k_par, VOCAB, D, C * HP * WP, NUM_CLASSES_PER_QUESTION, CMAX)

    logits = vqa_forward(params, input_ids, attention_mask, pixel_values,
                         QUESTION_IDX, NUM_CLASSES_PER_QUESTION)
    logits = jax.block_until_ready(logits)

    assert logits.shape == (B, NUM_CLASSES_PER_QUESTION[QUESTION_IDX])
    assert bool(jnp.all(jnp.isfinite(logits)))
    print("KERNEL_OK")
</pallas_src>

<mosaic_0001>
module attributes {stable_mosaic.version = 11 : i64} {
  func.func @_vqa_fused_kernel(%arg0: memref<8x1xi32, #tpu.memory_space<vmem>>, %arg1: memref<8x1xf32, #tpu.memory_space<vmem>>, %arg2: memref<8x1024xf32, #tpu.memory_space<vmem>>, %arg3: memref<50x128xbf16, #tpu.memory_space<vmem>>, %arg4: memref<1024x128xbf16, #tpu.memory_space<vmem>>, %arg5: memref<1x128xf32, #tpu.memory_space<vmem>>, %arg6: memref<128x128xbf16, #tpu.memory_space<vmem>>, %arg7: memref<1x128xf32, #tpu.memory_space<vmem>>, %arg8: memref<128x128xbf16, #tpu.memory_space<vmem>>, %arg9: memref<1x128xf32, #tpu.memory_space<vmem>>, %arg10: memref<8x128xf32, #tpu.memory_space<vmem>>) attributes {dimension_semantics = [], scalar_prefetch = 0 : i64, scratch_operands = 0 : i64, tpu.core_type = #tpu.core_type<tc>} {
    %c0 = arith.constant 0 : index
    %c0_0 = arith.constant 0 : index
    %0 = vector.load %arg0[%c0, %c0_0] : memref<8x1xi32, #tpu.memory_space<vmem>>, vector<8x1xi32>
    %1 = tpu.iota {dimensions = array<i32: 1>} : vector<8x50xi32>
    %2 = vector.broadcast %0 : vector<8x1xi32> to vector<8x50xi32>
    %3 = arith.cmpi eq, %1, %2 : vector<8x50xi32>
    %4 = arith.extui %3 : vector<8x50xi1> to vector<8x50xi32>
    %5 = arith.sitofp %4 : vector<8x50xi32> to vector<8x50xf32>
    %6 = arith.truncf %5 : vector<8x50xf32> to vector<8x50xbf16>
    %c0_1 = arith.constant 0 : index
    %c0_2 = arith.constant 0 : index
    %7 = vector.load %arg3[%c0_1, %c0_2] : memref<50x128xbf16, #tpu.memory_space<vmem>>, vector<50x128xbf16>
    %cst = arith.constant dense<0.000000e+00> : vector<8x128xf32>
    %8 = tpu.matmul %6, %7, %cst {dimension_numbers = #tpu.dot_dimension_numbers<[1], [0], [0], [1], [0, 0, 1, 1], [], []>} : vector<8x50xbf16>, vector<50x128xbf16>, vector<8x128xf32> -> vector<8x128xf32>
    %c0_3 = arith.constant 0 : index
    %c0_4 = arith.constant 0 : index
    %9 = vector.load %arg2[%c0_3, %c0_4] : memref<8x1024xf32, #tpu.memory_space<vmem>>, vector<8x1024xf32>
    %10 = arith.truncf %9 : vector<8x1024xf32> to vector<8x1024xbf16>
    %c0_5 = arith.constant 0 : index
    %c0_6 = arith.constant 0 : index
    %11 = vector.load %arg4[%c0_5, %c0_6] : memref<1024x128xbf16, #tpu.memory_space<vmem>>, vector<1024x128xbf16>
    %cst_7 = arith.constant dense<0.000000e+00> : vector<8x128xf32>
    %12 = tpu.matmul %10, %11, %cst_7 {dimension_numbers = #tpu.dot_dimension_numbers<[1], [0], [0], [1], [0, 0, 1, 1], [], []>} : vector<8x1024xbf16>, vector<1024x128xbf16>, vector<8x128xf32> -> vector<8x128xf32>
    %c0_8 = arith.constant 0 : index
    %c0_9 = arith.constant 0 : index
    %13 = vector.load %arg5[%c0_8, %c0_9] : memref<1x128xf32, #tpu.memory_space<vmem>>, vector<1x128xf32>
    %14 = vector.broadcast %13 : vector<1x128xf32> to vector<8x128xf32>
    %15 = arith.addf %12, %14 : vector<8x128xf32>
    %c0_10 = arith.constant 0 : index
    %c0_11 = arith.constant 0 : index
    %16 = vector.load %arg1[%c0_10, %c0_11] : memref<8x1xf32, #tpu.memory_space<vmem>>, vector<8x1xf32>
    %17 = vector.broadcast %16 : vector<8x1xf32> to vector<8x128xf32>
    %18 = arith.mulf %8, %17 : vector<8x128xf32>
    %19 = arith.addf %18, %15 : vector<8x128xf32>
    %20 = arith.truncf %19 : vector<8x128xf32> to vector<8x128xbf16>
    %c0_12 = arith.constant 0 : index
    %c0_13 = arith.constant 0 : index
    %21 = vector.load %arg6[%c0_12, %c0_13] : memref<128x128xbf16, #tpu.memory_space<vmem>>, vector<128x128xbf16>
    %cst_14 = arith.constant dense<0.000000e+00> : vector<8x128xf32>
    %22 = tpu.matmul %20, %21, %cst_14 {dimension_numbers = #tpu.dot_dimension_numbers<[1], [0], [0], [1], [0, 0, 1, 1], [], []>} : vector<8x128xbf16>, vector<128x128xbf16>, vector<8x128xf32> -> vector<8x128xf32>
    %c0_15 = arith.constant 0 : index
    %c0_16 = arith.constant 0 : index
    %23 = vector.load %arg7[%c0_15, %c0_16] : memref<1x128xf32, #tpu.memory_space<vmem>>, vector<1x128xf32>
    %24 = vector.broadcast %23 : vector<1x128xf32> to vector<8x128xf32>
    %25 = arith.addf %22, %24 : vector<8x128xf32>
    %26 = math.tanh %25 : vector<8x128xf32>
    %27 = arith.truncf %26 : vector<8x128xf32> to vector<8x128xbf16>
    %c0_17 = arith.constant 0 : index
    %c0_18 = arith.constant 0 : index
    %28 = vector.load %arg8[%c0_17, %c0_18] : memref<128x128xbf16, #tpu.memory_space<vmem>>, vector<128x128xbf16>
    %cst_19 = arith.constant dense<0.000000e+00> : vector<8x128xf32>
    %29 = tpu.matmul %27, %28, %cst_19 {dimension_numbers = #tpu.dot_dimension_numbers<[1], [0], [0], [1], [0, 0, 1, 1], [], []>} : vector<8x128xbf16>, vector<128x128xbf16>, vector<8x128xf32> -> vector<8x128xf32>
    %c0_20 = arith.constant 0 : index
    %c0_21 = arith.constant 0 : index
    %30 = vector.load %arg9[%c0_20, %c0_21] : memref<1x128xf32, #tpu.memory_space<vmem>>, vector<1x128xf32>
    %31 = vector.broadcast %30 : vector<1x128xf32> to vector<8x128xf32>
    %32 = arith.addf %29, %31 : vector<8x128xf32>
    %c0_22 = arith.constant 0 : index
    %c0_23 = arith.constant 0 : index
    %33 = vector.load %arg10[%c0_22, %c0_23] : memref<8x128xf32, #tpu.memory_space<vmem>>, vector<8x128xf32>
    tpu.vector_store %arg10[%c0_22, %c0_23], %32 {strides = array<i32>} : memref<8x128xf32, #tpu.memory_space<vmem>>, vector<8x128xf32>,
    return
  }
}

</mosaic_0001>

<bundles_post_ra>
// kernel: tpu_custom_call.1
= control target key start
LH: loop header
LB: loop body
LE: loop exit
PB: predicated region body
PF: predicated region fallthrough
CT: control target
= control target key end

     0   :  { %15 = vsyncpa [#allocation3], 0  ;;  %s1684_s0 = inlined_call_operand.vmem [shape: s32[8,1], index: 0, kind: input, shape index: {}]   ;;  %s1685_s1 = inlined_call_operand.vmem [shape: f32[8,1], index: 1, kind: input, shape index: {}]   ;;  %s1686_s2 = inlined_call_operand.hbm [shape: f32[8,1024], index: 2, kind: input, shape index: {}]   ;;  %s1687_s3 = inlined_call_operand.hbm [shape: bf16[50,128], index: 3, kind: input, shape index: {}]   ;;  %s1688_s4 = inlined_call_operand.hbm [shape: bf16[1024,128], index: 4, kind: input, shape index: {}]   ;;  %s1689_s5 = inlined_call_operand.vmem [shape: f32[1,128], index: 5, kind: input, shape index: {}]   ;;  %s1690_s6 = inlined_call_operand.hbm [shape: bf16[128,128], index: 6, kind: input, shape index: {}]   ;;  %s1691_s7 = inlined_call_operand.vmem [shape: f32[1,128], index: 7, kind: input, shape index: {}]   ;;  %s1692_s8 = inlined_call_operand.hbm [shape: bf16[128,128], index: 8, kind: input, shape index: {}]   ;;  %s1693_s9 = inlined_call_operand.vmem [shape: f32[1,128], index: 9, kind: input, shape index: {}]   ;;  %s1694_s10 = inlined_call_operand.hbm [shape: f32[8,128], index: 10, kind: output, shape index: {}]  }
   0x1   :  { %16 = vsyncpa [#allocation6], 0 }
   0x2   :  { %17 = vsyncpa [#allocation9], 0  ;;  %s38_s15 = sshll.u32 %s1687_s3, 4  ;;  %s39_s15 = int_to_ptr.hbm [resolvable:$true] %s38_s15 }
   0x3   :  { %18 = vsyncpa [#allocation4], 0  ;;  %s1586_s16 = smov [#allocation5]   ;;  %s66_s20 = sshll.u32 %s1690_s6, 4  ;;  %s67_s20 = int_to_ptr.hbm [resolvable:$true] %s66_s20 }
   0x4   :  { %s40_s17 = sshll.u32 %s1586_s16, 4  ;;  %s1587_s21 = smov 64   ;;  %s41_s17 = int_to_ptr.vmem [resolvable:$true] %s40_s17 }
   0x5   :  { %s1588_s22 = smov 4   ;;  %s1589_s23 = smov [#allocation8]  }
   0x6   :  { %46 = dma.hbm_to_vmem [thread:$0]  %s39_s15, 448, %s41_s17, [#allocation6], %s1587_s21, %s1587_s21, %s1588_s22  }
   0x7   :  { %s68_s24 = sshll.u32 %s1589_s23, 4  ;;  %s28_s27 = sshll.u32 %s1686_s2, 4  ;;  %s69_s24 = int_to_ptr.vmem [resolvable:$true] %s68_s24  ;;  %s29_s27 = int_to_ptr.hbm [resolvable:$true] %s28_s27 }
   0x8   :  { %74 = dma.hbm_to_vmem [thread:$0]  %s67_s20, 1024, %s69_s24, [#allocation9], %s1587_s21, %s1587_s21, %s1588_s22  }
   0x9   :  { %s51_s29 = sshll.u32 %s1688_s4, 4  ;;  %s1590_s30 = smov [#allocation2]   ;;  %s52_s29 = int_to_ptr.hbm [resolvable:$true] %s51_s29 }
   0xa   :  { %s30_s11 = sshll.u32 %s1590_s30, 4  ;;  %s1591_s6 = smov [#allocation7]   ;;  %s31_s11 = int_to_ptr.vmem [resolvable:$true] %s30_s11 }
   0xb   :  { %33 = dma.hbm_to_vmem [thread:$0]  %s29_s27, 1024, %s31_s11, [#allocation3]  }
   0xc   :  { %s53_s12 = sshll.u32 %s1591_s6, 4  ;;  %s81_s15 = sshll.u32 %s1692_s8, 4  ;;  %s54_s12 = int_to_ptr.vmem [resolvable:$true] %s53_s12  ;;  %s82_s15 = int_to_ptr.hbm [resolvable:$true] %s81_s15 }
   0xd   :  { %59 = dma.hbm_to_vmem [thread:$0]  %s52_s29, 8192, %s54_s12, [#allocation6], %s1587_s21, %s1587_s21, %s1588_s22  }
   0xe   :  { %s1592_s2 = smov [#allocation10]  }
   0xf   :  { %s83_s16 = sshll.u32 %s1592_s2, 4  ;;  %s84_s16 = int_to_ptr.vmem [resolvable:$true] %s83_s16 }
  0x10   :  { %89 = dma.hbm_to_vmem [thread:$0]  %s82_s15, 1024, %s84_s16, [#allocation9], %s1587_s21, %s1587_s21, %s1588_s22  }
  0x11   :  { %1578 = dma.done.wait [#allocation3], 1024  }
  0x12   :  { %1579 = vsyncadd [#allocation3], 4294966272 }
  0x13   :  { %1580 = dma.done.wait [#allocation6], 8640  }
  0x14   :  { %1581 = vsyncadd [#allocation6], 4294958656 }
  0x15   :  { %1582 = dma.done.wait [#allocation9], 2048  }
  0x16   :  { %1583 = vsyncadd [#allocation9], 4294965248  ;;  %v1593_v0 = vmov 0   ;;  %v113_v1 = vld [vmem:[%s1684_s0] sm:$0xff]  ;;  %v1353_v2 = vld [vmem:[#allocation7 + $0x78] sm:$0xff]  ;;  %vm155_vm0 = vcmask 1040384  }
  0x17   :  { %1428 = vset.pattern.permute.xlu0 %v1593_v0  ;;  %v1361_v3 = vld [vmem:[#allocation7 + $0xb8] sm:$0xff]  ;;  %717 = vmatpush.bf16.msra.mxu2 %v1353_v2  ;;  %v1352_v5 = vld [vmem:[#allocation7 + $0x70] sm:$0xff]  ;;  %v808_v11 = vld [vmem:[%s1685_s1] sm:$0xff]  ;;  %vm151_vm2 = vcmask 408576   ;;  %s1595_s22 = smov [#allocation11]   ;;  %s989_s26 = sshll.u32 %s1694_s10, 4  ;;  %s990_s26 = int_to_ptr.hbm [resolvable:$true] %s989_s26 }
  0x18   :  { %117 = vperm.xlu0 %1428, %v113_v1   ;;  %v1345_v4 = vld [vmem:[#allocation7 + $0x38] sm:$0xff]  ;;  %730 = vmatpush.bf16.msra.mxu3 %v1361_v3  ;;  %v1360_v8 = vld [vmem:[#allocation7 + $0xb0] sm:$0xff]  ;;  %v1351_v12 = vld [vmem:[#allocation7 + $0x68] sm:$0xff]  ;;  %s987_s23 = sshll.u32 %s1595_s22, 4  ;;  %s988_s23 = int_to_ptr.vmem [resolvable:$true] %s987_s23 }
  0x19   :  { %v129_v6 = vld [vmem:[#allocation5 + $0x18] sm:$0x1]  ;;  %704 = vmatpush.bf16.msra.mxu1 %v1345_v4  ;;  %v1344_v9 = vld [vmem:[#allocation7 + $0x30] sm:$0xff]  ;;  %v1359_v14 = vld [vmem:[#allocation7 + $0xa8] sm:$0xff] }
  0x1a   :  { %v143_v7 = vunpack.c.l.b16 %v129_v6  ;;  %v1343_v15 = vld [vmem:[#allocation7 + $0x28] sm:$0xff]  ;;  %v1337_v16 = vld [vmem:[#allocation5 + $0x10] sm:$0xff]  ;;  %v1350_v17 = vld [vmem:[#allocation7 + $0x60] sm:$0xff] }
  0x1b   :  { %718 = vmatpush.bf16.msra.mxu2 %v1352_v5  ;;  %v1358_v18 = vld [vmem:[#allocation7 + $0xa0] sm:$0xff]  ;;  %v1336_v20 = vld [vmem:[#allocation5 + $0x8] sm:$0xff]  ;;  %v1349_v21 = vld [vmem:[#allocation7 + $0x58] sm:$0xff] }
  0x1c   :  { %v147_v10 = vpack.c.b16 %v143_v7, %v143_v7  ;;  %731 = vmatpush.bf16.msra.mxu3 %v1360_v8  ;;  %v1342_v19 = vld [vmem:[#allocation7 + $0x20] sm:$0xff]  ;;  %v1357_v22 = vld [vmem:[#allocation7 + $0x98] sm:$0xff]  ;;  %v1348_v26 = vld [vmem:[#allocation7 + $0x50] sm:$0xff] }
  0x1d   :  { %705 = vmatpush.bf16.msra.mxu1 %v1344_v9  ;;  %v1341_v23 = vld [vmem:[#allocation7 + $0x18] sm:$0xff]  ;;  %v1335_v24 = vld [vmem:[#allocation5] sm:$0xff]  ;;  %v1356_v27 = vld [vmem:[#allocation7 + $0x90] sm:$0xff] }
  0x1e   :  { %v157_v13 = vsel %vm155_vm0, %v147_v10, 0  ;;  %v1369_v25 = vld [vmem:[#allocation7 + $0xf8] sm:$0xff]  ;;  %v1340_v28 = vld [vmem:[#allocation7 + $0x10] sm:$0xff]  ;;  %v1347_v30 = vld [vmem:[#allocation7 + $0x48] sm:$0xff] }
  0x1f   :  { %163 = vmatpush.bf16.msra.mxu0 %v157_v13  ;;  %719 = vmatpush.bf16.msra.mxu2 %v1351_v12  ;;  %v1368_v29 = vld [vmem:[#allocation7 + $0xf0] sm:$0xff]  ;;  %v1355_v31 = vld [vmem:[#allocation7 + $0x88] sm:$0xff]  ;;  %v1346_v34 = vld [vmem:[#allocation7 + $0x40] sm:$0xff] }
  0x20   :  { %811 = vperm.xlu0 %1428, %v808_v11   ;;  %732 = vmatpush.bf16.msra.mxu3 %v1359_v14  ;;  %v1339_v32 = vld [vmem:[#allocation7 + $0x8] sm:$0xff]  ;;  %v1385_v35 = vld [vmem:[#allocation7 + $0x178] sm:$0xff]  ;;  %v1354_v36 = vld [vmem:[#allocation7 + $0x80] sm:$0xff]  ;;  %v114_v14 = vlaneseq }
  0x21   :  { %706 = vmatpush.bf16.msra.mxu1 %v1343_v15  ;;  %v1367_v33 = vld [vmem:[#allocation7 + $0xe8] sm:$0xff]  ;;  %v1393_v37 = vld [vmem:[#allocation7 + $0x1b8] sm:$0xff]  ;;  %v1338_v38 = vld [vmem:[#allocation7] sm:$0xff] }
  0x22   :  { %v1366_v39 = vld [vmem:[#allocation7 + $0xe0] sm:$0xff]  ;;  %v1377_v40 = vld [vmem:[#allocation7 + $0x138] sm:$0xff]  ;;  %v1384_v41 = vld [vmem:[#allocation7 + $0x170] sm:$0xff]  ;;  %v115_v15 = vand.u32 127, %v114_v14 }
  0x23   :  { %164 = vmatpush.bf16.msra.mxu0 %v1337_v16  ;;  %720 = vmatpush.bf16.msra.mxu2 %v1350_v17  ;;  %v1392_v42 = vld [vmem:[#allocation7 + $0x1b0] sm:$0xff]  ;;  %v1365_v43 = vld [vmem:[#allocation7 + $0xd8] sm:$0xff]  ;;  %v1383_v45 = vld [vmem:[#allocation7 + $0x168] sm:$0xff]  ;;  %v1594_v17 = vmov 0.0  }
  0x24   :  { %733 = vmatpush.bf16.msra.mxu3 %v1358_v18  ;;  %v1376_v44 = vld [vmem:[#allocation7 + $0x130] sm:$0xff]  ;;  %v1391_v46 = vld [vmem:[#allocation7 + $0x1a8] sm:$0xff]  ;;  %v1382_v49 = vld [vmem:[#allocation7 + $0x160] sm:$0xff] }
  0x25   :  { %707 = vmatpush.bf16.msra.mxu1 %v1342_v19  ;;  %v1364_v47 = vld [vmem:[#allocation7 + $0xd0] sm:$0xff]  ;;  %v1375_v48 = vld [vmem:[#allocation7 + $0x128] sm:$0xff]  ;;  %v1390_v51 = vld [vmem:[#allocation7 + $0x1a0] sm:$0xff] }
  0x26   :  { %v1363_v50 = vld [vmem:[#allocation7 + $0xc8] sm:$0xff]  ;;  %v1374_v54 = vld [vmem:[#allocation7 + $0x120] sm:$0xff]  ;;  %v1381_v55 = vld [vmem:[#allocation7 + $0x158] sm:$0xff] }
  0x27   :  { %165 = vmatpush.bf16.msra.mxu0 %v1336_v20  ;;  %721 = vmatpush.bf16.msra.mxu2 %v1349_v21  ;;  %v173_v52 = vld [vmem:[#allocation2 + $0x8] sm:$0xff]  ;;  %v174_v56 = vld [vmem:[#allocation2 + $0x10] sm:$0xff]  ;;  %v1362_v58 = vld [vmem:[#allocation7 + $0xc0] sm:$0xff] }
  0x28   :  { %734 = vmatpush.bf16.msra.mxu3 %v1357_v22  ;;  %v181_v53 = vpack.c.bf16 %v173_v52, %v173_v52  ;;  %v182_v57 = vpack.c.bf16 %v174_v56, %v174_v56  ;;  %v1389_v59 = vld [vmem:[#allocation7 + $0x198] sm:$0xff]  ;;  %v172_v60 = vld [vmem:[#allocation2] sm:$0xff]  ;;  %v1380_v63 = vld [vmem:[#allocation7 + $0x150] sm:$0xff] }
  0x29   :  { %708 = vmatpush.bf16.msra.mxu1 %v1341_v23  ;;  %v180_v61 = vpack.c.bf16 %v172_v60, %v172_v60  ;;  %v1373_v62 = vld [vmem:[#allocation7 + $0x118] sm:$0xff]  ;;  %v1388_v0 = vld [vmem:[#allocation7 + $0x190] sm:$0xff]  ;;  %v1379_v2 = vld [vmem:[#allocation7 + $0x148] sm:$0xff] }
  0x2a   :  { %v1372_v1 = vld [vmem:[#allocation7 + $0x110] sm:$0xff]  ;;  %v1387_v3 = vld [vmem:[#allocation7 + $0x188] sm:$0xff]  ;;  %v1378_v5 = vld [vmem:[#allocation7 + $0x140] sm:$0xff] }
  0x2b   :  { %166 = vmatpush.bf16.msra.mxu0 %v1335_v24  ;;  %722 = vmatpush.bf16.msra.mxu2 %v1348_v26  ;;  %v1371_v4 = vld [vmem:[#allocation7 + $0x108] sm:$0xff]  ;;  %v1386_v6 = vld [vmem:[#allocation7 + $0x180] sm:$0xff]  ;;  %v178_v10 = vld [vmem:[#allocation2 + $0x30] sm:$0xff] }
  0x2c   :  { %735 = vmatpush.bf16.msra.mxu3 %v1356_v27  ;;  %v177_v7 = vld [vmem:[#allocation2 + $0x28] sm:$0xff]  ;;  %v1370_v9 = vld [vmem:[#allocation7 + $0x100] sm:$0xff]  ;;  %v186_v11 = vpack.c.bf16 %v178_v10, %v178_v10  ;;  %v1401_v19 = vld [vmem:[#allocation7 + $0x1f8] sm:$0xff] }
  0x2d   :  { %709 = vmatpush.bf16.msra.mxu1 %v1340_v28  ;;  %v185_v8 = vpack.c.bf16 %v177_v7, %v177_v7  ;;  %v176_v12 = vld [vmem:[#allocation2 + $0x20] sm:$0xff]  ;;  %v1400_v21 = vld [vmem:[#allocation7 + $0x1f0] sm:$0xff]  ;;  %v175_v24 = vld [vmem:[#allocation2 + $0x18] sm:$0xff] }
  0x2e   :  { %v184_v13 = vpack.c.bf16 %v176_v12, %v176_v12  ;;  %v1399_v22 = vld [vmem:[#allocation7 + $0x1e8] sm:$0xff]  ;;  %v1398_v23 = vld [vmem:[#allocation7 + $0x1e0] sm:$0xff]  ;;  %v1397_v26 = vld [vmem:[#allocation7 + $0x1d8] sm:$0xff] }
  0x2f   :  { %743 = vmatpush.bf16.msrb.mxu0 %v1369_v25  ;;  %723 = vmatpush.bf16.msra.mxu2 %v1347_v30  ;;  %v183_v25 = vpack.c.bf16 %v175_v24, %v175_v24  ;;  %v1396_v27 = vld [vmem:[#allocation7 + $0x1d0] sm:$0xff]  ;;  %v1395_v28 = vld [vmem:[#allocation7 + $0x1c8] sm:$0xff]  ;;  %v179_v30 = vld [vmem:[#allocation2 + $0x38] sm:$0xff] }
  0x30   :  { %736 = vmatpush.bf16.msra.mxu3 %v1355_v31  ;;  %v187_v31 = vpack.c.bf16 %v179_v30, %v179_v30  ;;  %v1402_v52 = vld [vmem:[#allocation8] sm:$0xff]  ;;  %v1417_v56 = vld [vmem:[#allocation10 + $0x38] sm:$0xff]  ;;  %v1412_v12 = vld [vmem:[#allocation10 + $0x10] sm:$0xff] }
  0x31   :  { %710 = vmatpush.bf16.msra.mxu1 %v1339_v32  ;;  %v1410_v14 = vld [vmem:[#allocation10] sm:$0xff] }
  0x33   :  { %744 = vmatpush.bf16.msrb.mxu0 %v1368_v29  ;;  %724 = vmatpush.bf16.msra.mxu2 %v1346_v34  ;;  %v1394_v29 = vld [vmem:[#allocation7 + $0x1c0] sm:$0xff] }
  0x34   :  { %737 = vmatpush.bf16.msra.mxu3 %v1354_v36  ;;  %v1408_v36 = vld [vmem:[#allocation8 + $0x30] sm:$0xff] }
  0x35   :  { %711 = vmatpush.bf16.msra.mxu1 %v1338_v38 }
  0x36   :  { %725 = vmatmul.bf16.vlgmr.msra.gmra.mxu2 %v181_v53  ;;  %v1429_v53 = vld [vmem:[%s1689_s5] ss:$0 sm:$0xff] }
  0x37   :  { %745 = vmatpush.bf16.msrb.mxu0 %v1367_v33  ;;  %769 = vmatpush.bf16.msrb.mxu2 %v1385_v35  ;;  %v1409_v35 = vld [vmem:[#allocation8 + $0x38] sm:$0xff] }
  0x38   :  { %782 = vmatpush.bf16.msrb.mxu3 %v1393_v37  ;;  %712 = vmatmul.bf16.vlgmr.msra.gmra.mxu1 %v180_v61 }
  0x39   :  { %756 = vmatpush.bf16.msrb.mxu1 %v1377_v40  ;;  %738 = vmatmul.bf16.vlgmr.msra.gmra.mxu3 %v182_v57  ;;  %v1407_v40 = vld [vmem:[#allocation8 + $0x28] sm:$0xff]  ;;  %v1416_v57 = vld [vmem:[#allocation10 + $0x30] sm:$0xff] }
  0x3b   :  { %746 = vmatpush.bf16.msrb.mxu0 %v1366_v39  ;;  %770 = vmatpush.bf16.msrb.mxu2 %v1384_v41 }
  0x3c   :  { %783 = vmatpush.bf16.msrb.mxu3 %v1392_v42  ;;  %v1406_v42 = vld [vmem:[#allocation8 + $0x20] sm:$0xff] }
  0x3d   :  { %757 = vmatpush.bf16.msrb.mxu1 %v1376_v44 }
  0x3f   :  { %747 = vmatpush.bf16.msrb.mxu0 %v1365_v43  ;;  %771 = vmatpush.bf16.msrb.mxu2 %v1383_v45  ;;  %v1405_v45 = vld [vmem:[#allocation8 + $0x18] sm:$0xff] }
  0x40   :  { %784 = vmatpush.bf16.msrb.mxu3 %v1391_v46  ;;  %v1404_v46 = vld [vmem:[#allocation8 + $0x10] sm:$0xff] }
  0x41   :  { %758 = vmatpush.bf16.msrb.mxu1 %v1375_v48 }
  0x43   :  { %748 = vmatpush.bf16.msrb.mxu0 %v1364_v47  ;;  %772 = vmatpush.bf16.msrb.mxu2 %v1382_v49 }
  0x44   :  { %785 = vmatpush.bf16.msrb.mxu3 %v1390_v51 }
  0x45   :  { %759 = vmatpush.bf16.msrb.mxu1 %v1374_v54 }
  0x47   :  { %749 = vmatpush.bf16.msrb.mxu0 %v1363_v50  ;;  %773 = vmatpush.bf16.msrb.mxu2 %v1381_v55  ;;  %v1403_v50 = vld [vmem:[#allocation8 + $0x8] sm:$0xff] }
  0x48   :  { %786 = vmatpush.bf16.msrb.mxu3 %v1389_v59  ;;  %v1415_v59 = vld [vmem:[#allocation10 + $0x28] sm:$0xff] }
  0x49   :  { %760 = vmatpush.bf16.msrb.mxu1 %v1373_v62  ;;  %v1414_v62 = vld [vmem:[#allocation10 + $0x20] sm:$0xff] }
  0x4b   :  { %750 = vmatpush.bf16.msrb.mxu0 %v1362_v58  ;;  %774 = vmatpush.bf16.msrb.mxu2 %v1380_v63 }
  0x4c   :  { %787 = vmatpush.bf16.msrb.mxu3 %v1388_v0  ;;  %v1413_v0 = vld [vmem:[#allocation10 + $0x18] sm:$0xff] }
  0x4d   :  { %761 = vmatpush.bf16.msrb.mxu1 %v1372_v1 }
  0x4f   :  { %775 = vmatpush.bf16.msrb.mxu2 %v1379_v2 }
  0x50   :  { %788 = vmatpush.bf16.msrb.mxu3 %v1387_v3 }
  0x51   :  { %762 = vmatpush.bf16.msrb.mxu1 %v1371_v4 }
  0x53   :  { %776 = vmatpush.bf16.msrb.mxu2 %v1378_v5 }
  0x54   :  { %789 = vmatpush.bf16.msrb.mxu3 %v1386_v6 }
  0x55   :  { %763 = vmatpush.bf16.msrb.mxu1 %v1370_v9 }
  0x56   :  { %777 = vmatmul.bf16.vlgmr.msrb.gmra.mxu2 %v185_v8 }
  0x57   :  { %790 = vmatmul.bf16.vlgmr.msrb.gmra.mxu3 %v186_v11  ;;  %968 = vmatpush.bf16.msra.mxu2 %v1417_v56 }
  0x58   :  { %764 = vmatmul.bf16.vlgmr.msrb.gmra.mxu1 %v184_v13  ;;  %v1411_v13 = vld [vmem:[#allocation10 + $0x8] sm:$0xff] }
  0x59   :  { %885 = vmatpush.bf16.msra.mxu1 %v1409_v35 }
  0x5b   :  { %969 = vmatpush.bf16.msra.mxu2 %v1416_v57 }
  0x5d   :  { %886 = vmatpush.bf16.msra.mxu1 %v1408_v36 }
  0x5f   :  { %970 = vmatpush.bf16.msra.mxu2 %v1415_v59 }
  0x61   :  { %887 = vmatpush.bf16.msra.mxu1 %v1407_v40 }
  0x63   :  { %971 = vmatpush.bf16.msra.mxu2 %v1414_v62 }
  0x65   :  { %888 = vmatpush.bf16.msra.mxu1 %v1406_v42 }
  0x67   :  { %972 = vmatpush.bf16.msra.mxu2 %v1413_v0 }
  0x69   :  { %889 = vmatpush.bf16.msra.mxu1 %v1405_v45 }
  0x6b   :  { %973 = vmatpush.bf16.msra.mxu2 %v1412_v12 }
  0x6d   :  { %890 = vmatpush.bf16.msra.mxu1 %v1404_v46 }
  0x6f   :  { %974 = vmatpush.bf16.msra.mxu2 %v1411_v13 }
  0x71   :  { %891 = vmatpush.bf16.msra.mxu1 %v1403_v50 }
  0x73   :  { %975 = vmatpush.bf16.msra.mxu2 %v1410_v14 }
  0x75   :  { %892 = vmatpush.bf16.msra.mxu1 %v1402_v52 }
  0x8a   :  { %v118_v16 = vpop.permute.xlu0 %117 }
  0x8b   :  { %vm119_vm1 = vcmp.eq.s32.totalorder %v115_v15, %v118_v16  ;;  %v1430_v15 = vld [vmem:[%s1691_s7] ss:$0 sm:$0xff] }
  0x8c   :  { %v1001_v18 = vsel %vm119_vm1, 1.0, %v1594_v17 }
  0x8d   :  { %v122_v20 = vpack.c.bf16 %v1001_v18, %v1001_v18 }
  0x8f   :  { %1014 = vmatmul.msk.bf16.vlgmr.msra.gmra.mxu0 %vm151_vm2, %v122_v20 }
  0x90   :  { %795 = vmatpush.bf16.msra.mxu0 %v1401_v19 }
  0x92   :  { %v812_v5 = vpop.permute.xlu0 %811 }
  0x94   :  { %796 = vmatpush.bf16.msra.mxu0 %v1400_v21  ;;  %v1431_v21 = vld [vmem:[%s1693_s9] ss:$0 sm:$0xff] }
  0x98   :  { %797 = vmatpush.bf16.msra.mxu0 %v1399_v22 }
  0x9c   :  { %798 = vmatpush.bf16.msra.mxu0 %v1398_v23 }
  0x9f   :  { %751 = vmatmul.bf16.vlgmr.msrb.gmra.mxu0 %v183_v25 }
  0xa0   :  { %799 = vmatpush.bf16.msra.mxu0 %v1397_v26 }
  0xa4   :  { %800 = vmatpush.bf16.msra.mxu0 %v1396_v27 }
  0xa8   :  { %801 = vmatpush.bf16.msra.mxu0 %v1395_v28 }
  0xac   :  { %802 = vmatpush.bf16.msra.mxu0 %v1394_v29 }
  0xaf   :  { %803 = vmatmul.bf16.vlgmr.msra.gmra.mxu0 %v187_v31 }
  0xb5   :  { %v713_v32 = vpop.f32.mrf.mxu1 }
  0xb6   :  { %v714_v54 = vadd.f32 %v1429_v53, %v713_v32 }
  0xb9   :  { %v726_v33 = vpop.f32.mrf.mxu2 }
  0xba   :  { %v727_v58 = vadd.f32 %v726_v33, %v714_v54 }
  0xbc   :  { %v739_v34 = vpop.f32.mrf.mxu3 }
  0xbd   :  { %v715_v37 = vpop.f32.mrf.mxu1  ;;  %v740_v60 = vadd.f32 %v739_v34, %v727_v58 }
  0xc1   :  { %v728_v38 = vpop.f32.mrf.mxu2 }
  0xc4   :  { %v741_v39 = vpop.f32.mrf.mxu3 }
  0xd5   :  { %v765_v41 = vpop.f32.mrf.mxu1 }
  0xd9   :  { %v778_v43 = vpop.f32.mrf.mxu2 }
  0xda   :  { %v791_v44 = vpop.f32.mrf.mxu3 }
  0xdd   :  { %v767_v47 = vpop.f32.mrf.mxu1 }
  0xe1   :  { %v780_v48 = vpop.f32.mrf.mxu2 }
  0xe2   :  { %v793_v49 = vpop.f32.mrf.mxu3 }
 0x10c   :  { %v168_v51 = vpop.f32.mrf.mxu0 }
 0x10d   :  { %v814_v7 = vmul.f32 %v812_v5, %v168_v51 }
 0x114   :  { %v170_v55 = vpop.f32.mrf.mxu0 }
 0x11c   :  { %v752_v61 = vpop.f32.mrf.mxu0 }
 0x11d   :  { %v753_v63 = vadd.f32 %v752_v61, %v740_v60 }
 0x11f   :  { %v766_v1 = vadd.f32 %v765_v41, %v753_v63 }
 0x121   :  { %v779_v3 = vadd.f32 %v778_v43, %v766_v1 }
 0x123   :  { %v792_v4 = vadd.f32 %v791_v44, %v779_v3 }
 0x124   :  { %v754_v2 = vpop.f32.mrf.mxu0 }
 0x12c   :  { %v804_v6 = vpop.f32.mrf.mxu0 }
 0x12d   :  { %v805_v8 = vadd.f32 %v804_v6, %v792_v4 }
 0x12f   :  { %v815_v9 = vadd.f32 %v814_v7, %v805_v8 }
 0x131   :  { %v816_v10 = vpack.c.bf16 %v815_v9, %v815_v9 }
 0x133   :  { %893 = vmatmul.bf16.vlgmr.msra.gmra.mxu1 %v816_v10 }
 0x134   :  { %v806_v11 = vpop.f32.mrf.mxu0 }
 0x1b0   :  { %v894_v16 = vpop.f32.mrf.mxu1 }
 0x1b1   :  { %v895_v17 = vadd.f32 %v1430_v15, %v894_v16 }
 0x1b3   :  { %1432 = vtanh.f32 %v895_v17 }
 0x1b8   :  { %v896_v18 = vpop.f32.mrf.mxu1 }
 0x1b9   :  { %v1433_v19 = vpop.eup %1432 }
 0x1ba   :  { %v899_v20 = vpack.c.bf16 %v1433_v19, %v1433_v19 }
 0x1bc   :  { %976 = vmatmul.bf16.vlgmr.msra.gmra.mxu2 %v899_v20 }
 0x23f   :  { %v977_v22 = vpop.f32.mrf.mxu2 }
 0x240   :  { %v978_v23 = vadd.f32 %v1431_v21, %v977_v22 }
 0x242   :  { %981 = vst [vmem:[#allocation11] sm:$0xff] %v978_v23 }
 0x243   :  { %992 = dma.vmem_to_hbm [thread:$0]  %s988_s23, 128, %s990_s26, [#allocation4]  }
 0x247   :  { %v979_v24 = vpop.f32.mrf.mxu2 }
 0x248   :  { %1584 = dma.done.wait [#allocation4], 128  }
 0x249   :  { %1585 = vsyncadd [#allocation4], 4294967168 }
 0x24a   :  { %997 = vsyncpa [#allocation3], 1 }
 0x24b   :  { %998 = vsyncpa [#allocation6], 1 }
 0x24c   :  { %999 = vsyncpa [#allocation9], 1 }
 0x24d   :  { %1000 = vsyncpa [#allocation4], 1 }

</bundles_post_ra>
